<compile_context>
chip_gen: v7x
topology: tpu7x:2x2x1
jax: 0.10.0
libtpu: 0.0.40
codegen_flags: <defaults>
</compile_context>

<pallas_src>
import functools

import jax
import jax.numpy as jnp
from jax.experimental import pallas as pl
from jax.experimental.pallas import tpu as pltpu

EPS = 1e-5


def _round_up(n, m):
    return (n + m - 1) // m * m


def _pick_class_tile(c_pad, tn):
    """Largest multiple of 128 that divides c_pad and is <= tn."""
    best = 128
    t = 128
    while t <= min(tn, c_pad):
        if c_pad % t == 0:
            best = t
        t += 128
    return best


# --------------------------------------------------------------------------
# Stage 1: feat = BN1 -> ReLU -> Linear1(bias=False) -> BN2
# --------------------------------------------------------------------------
def feat_kernel(x_ref, g1_ref, b1_ref, w1_ref, g2_ref, b2_ref,
                feat_ref, featb_ref):
    x = x_ref[...].astype(jnp.float32)                     # (B, D_in)
    inv_b = 1.0 / x.shape[0]

    # --- BatchNorm1d(input_dim): one-pass batch stats, folded into one FMA ---
    s1 = jnp.sum(x, axis=0, keepdims=True)                 # XLU sublane reduce
    s2 = jnp.sum(x * x, axis=0, keepdims=True)
    mean1 = s1 * inv_b
    var1 = jnp.maximum(s2 * inv_b - mean1 * mean1, 0.0)    # biased var, clamped
    scale1 = g1_ref[...] * jax.lax.rsqrt(var1 + EPS)       # (1, D_in)
    shift1 = b1_ref[...] - mean1 * scale1

    # --- ReLU ---
    h = jnp.maximum(x * scale1 + shift1, 0.0)

    # --- Linear(input_dim -> num_bottleneck, bias=False): bf16 MXU, f32 acc ---
    z = jnp.dot(h.astype(jnp.bfloat16), w1_ref[...],
                preferred_element_type=jnp.float32)        # (B, D_b) f32

    # --- BatchNorm1d(num_bottleneck) ---
    t1 = jnp.sum(z, axis=0, keepdims=True)
    t2 = jnp.sum(z * z, axis=0, keepdims=True)
    mean2 = t1 * inv_b
    var2 = jnp.maximum(t2 * inv_b - mean2 * mean2, 0.0)
    scale2 = g2_ref[...] * jax.lax.rsqrt(var2 + EPS)       # (1, D_b)
    shift2 = b2_ref[...] - mean2 * scale2
    feat = z * scale2 + shift2                             # (B, D_b) f32

    feat_ref[...] = feat.astype(feat_ref.dtype)            # returned to caller
    featb_ref[...] = feat.astype(featb_ref.dtype)          # bf16 MXU operand


# --------------------------------------------------------------------------
# Stage 2: classifier tile: Linear(num_bottleneck -> tile_n), bf16 MXU, f32 acc
# --------------------------------------------------------------------------
def classifier_kernel(feat_ref, w2_ref, y_ref):
    y_ref[...] = jnp.dot(feat_ref[...], w2_ref[...],
                         preferred_element_type=jnp.float32).astype(y_ref.dtype)


# --------------------------------------------------------------------------
# Wrappers
# --------------------------------------------------------------------------
def prepare_params(gamma1, beta1, w1_t, gamma2, beta2, w2_t):
    """One-time parameter prep (call ONCE, not per forward).

    Casts weights to bf16 and pads the classifier weight's class dim up to a
    multiple of 128 so the kernel output is lane-dense with unmasked stores.
    """
    _, C = w2_t.shape
    c_pad = _round_up(C, 128)
    w1_b = w1_t.astype(jnp.bfloat16)
    w2_b = w2_t.astype(jnp.bfloat16)
    if c_pad != C:
        w2_b = jnp.pad(w2_b, ((0, 0), (0, c_pad - C)))
    return (gamma1, beta1, w1_b, gamma2, beta2, w2_b)


@functools.partial(jax.jit, static_argnames=("class_num", "tn"))
def class_block_forward(x, params, *, class_num, tn=2048):
    """x: (B, D_in); params from prepare_params. Returns (y (B, class_num), feat)."""
    gamma1, beta1, w1_b, gamma2, beta2, w2_b = params
    B, d_in = x.shape
    d_b, c_pad = w2_b.shape
    tile_n = _pick_class_tile(c_pad, tn)
    n_tiles = c_pad // tile_n

    # ---------------- stage 1: feat (single VMEM-resident call) ----------------
    feat_vmem = (2 * (B * d_in * x.dtype.itemsize + d_in * d_b * 2
                      + 2 * (d_in + d_b) * 4 + B * d_b * 6)
                 + 3 * B * d_in * 4 + 3 * B * d_b * 4)
    feat_vmem = min(max(int(feat_vmem * 1.5), 16 << 20), 64 << 20)
    feat_flops = 2 * B * d_in * d_b + 10 * B * (d_in + d_b)
    feat_bytes = (B * d_in * x.dtype.itemsize + d_in * d_b * 2
                  + 2 * (d_in + d_b) * 4 + B * d_b * 6)

    feat, feat_b = pl.pallas_call(
        feat_kernel,
        out_shape=(
            jax.ShapeDtypeStruct((B, d_b), jnp.float32),
            jax.ShapeDtypeStruct((B, d_b), jnp.bfloat16),
        ),
        compiler_params=pltpu.CompilerParams(vmem_limit_bytes=feat_vmem),
        cost_estimate=pl.CostEstimate(flops=feat_flops, transcendentals=d_in + d_b,
                                      bytes_accessed=feat_bytes),
    )(x, gamma1, beta1, w1_b, gamma2, beta2)
    # TODO(synk): for very large B (f32 x/h/z temporaries approaching VMEM), tile
    # the feat stage over batch with a two-pass BN-stat reduction.

    # ---------------- stage 2: classifier, class-tiled, megacore-parallel ------
    cls_vmem = 2 * (B * d_b * 2 + d_b * tile_n * 2 + B * tile_n * 4)
    cls_vmem = min(max(int(cls_vmem * 1.5), 16 << 20), 64 << 20)
    cls_flops = 2 * B * d_b * c_pad
    cls_bytes = B * d_b * 2 + d_b * c_pad * 2 + B * c_pad * 4

    y = pl.pallas_call(
        classifier_kernel,
        out_shape=jax.ShapeDtypeStruct((B, c_pad), jnp.float32),
        grid_spec=pltpu.PrefetchScalarGridSpec(
            num_scalar_prefetch=0,
            grid=(n_tiles,),
            in_specs=[
                pl.BlockSpec((B, d_b), lambda j: (0, 0)),       # feat (resident)
                pl.BlockSpec((d_b, tile_n), lambda j: (0, j)),  # w2^T class tile
            ],
            out_specs=pl.BlockSpec((B, tile_n), lambda j: (0, j)),
        ),
        compiler_params=pltpu.CompilerParams(
            dimension_semantics=("parallel",),   # class tiles independent -> megacore
            vmem_limit_bytes=cls_vmem),
        cost_estimate=pl.CostEstimate(flops=cls_flops, transcendentals=0,
                                      bytes_accessed=cls_bytes),
    )(feat_b, w2_b)

    if c_pad != class_num:
        y = y[:, :class_num]   # slice only when padding was actually needed
    return y, feat


def class_block_ref(x, gamma1, beta1, w1_t, gamma2, beta2, w2_t):
    """Pure-JAX f32 reference (training-mode BN forward)."""
    x = x.astype(jnp.float32)
    m1 = jnp.mean(x, axis=0, keepdims=True)
    v1 = jnp.mean((x - m1) ** 2, axis=0, keepdims=True)
    h = jnp.maximum((x - m1) * jax.lax.rsqrt(v1 + EPS) * gamma1 + beta1, 0.0)
    z = h @ w1_t
    m2 = jnp.mean(z, axis=0, keepdims=True)
    v2 = jnp.mean((z - m2) ** 2, axis=0, keepdims=True)
    feat = (z - m2) * jax.lax.rsqrt(v2 + EPS) * gamma2 + beta2
    return feat @ w2_t, feat


def init_params(key, input_dim, class_num, num_bottleneck):
    k1, k2 = jax.random.split(key)
    # BatchNorm affine params (weights_init_kaiming -> weight=1, bias=0)
    gamma1 = jnp.ones((1, input_dim), jnp.float32)
    beta1 = jnp.zeros((1, input_dim), jnp.float32)
    gamma2 = jnp.ones((1, num_bottleneck), jnp.float32)
    beta2 = jnp.zeros((1, num_bottleneck), jnp.float32)
    # Linear(input_dim, num_bottleneck, bias=False): kaiming_normal, a=0,
    # mode='fan_out' -> fan_out = num_bottleneck, std = sqrt(2/fan_out).
    std1 = (2.0 / num_bottleneck) ** 0.5
    w1 = std1 * jax.random.normal(k1, (num_bottleneck, input_dim), jnp.float32)
    # classifier Linear(num_bottleneck, class_num, bias=False): normal std=0.001
    w2 = 0.001 * jax.random.normal(k2, (class_num, num_bottleneck), jnp.float32)
    # pre-transpose for the kernel: (in_features, out_features)
    return gamma1, beta1, w1.T, gamma2, beta2, w2.T


if __name__ == "__main__":
    # NOTE: B=8 keeps the demo small. For real throughput batch calls so
    # B >= 256 (>=128 on v5e) and a multiple of 16 to fill the MXU M dimension
    # and avoid partially packed bf16 vregs.
    B, input_dim, num_bottleneck, class_num = 8, 32, 256, 16

    key = jax.random.PRNGKey(0)
    kx, kp = jax.random.split(key)
    x = jax.random.normal(kx, (B, input_dim), jnp.float32)
    raw_params = init_params(kp, input_dim, class_num, num_bottleneck)

    # One-time prep: bf16 weights + class-dim padding (not per-forward traffic).
    params = prepare_params(*raw_params)
    params = jax.block_until_ready(params)

    y, feat = class_block_forward(x, params, class_num=class_num)
    jax.block_until_ready((y, feat))

    assert y.shape == (B, class_num)
    assert feat.shape == (B, num_bottleneck)

    # Correctness vs pure-JAX f32 reference (loose tol: bf16 MXU operands).
    y_ref, feat_ref = class_block_ref(x, *raw_params)
    assert float(jnp.max(jnp.abs(feat - feat_ref))) < 1e-1
    assert float(jnp.max(jnp.abs(y - y_ref))) < 1e-1

    print("KERNEL_OK")
</pallas_src>

<mosaic_0001>
module attributes {stable_mosaic.version = 11 : i64} {
  func.func @feat_kernel(%arg0: memref<8x32xf32, #tpu.memory_space<vmem>>, %arg1: memref<1x32xf32, #tpu.memory_space<vmem>>, %arg2: memref<1x32xf32, #tpu.memory_space<vmem>>, %arg3: memref<32x256xbf16, #tpu.memory_space<vmem>>, %arg4: memref<1x256xf32, #tpu.memory_space<vmem>>, %arg5: memref<1x256xf32, #tpu.memory_space<vmem>>, %arg6: memref<8x256xf32, #tpu.memory_space<vmem>>, %arg7: memref<8x256xbf16, #tpu.memory_space<vmem>>) attributes {dimension_semantics = [], scalar_prefetch = 0 : i64, scratch_operands = 0 : i64, tpu.core_type = #tpu.core_type<tc>} {
    %c0 = arith.constant 0 : index
    %c0_0 = arith.constant 0 : index
    %0 = vector.load %arg0[%c0, %c0_0] : memref<8x32xf32, #tpu.memory_space<vmem>>, vector<8x32xf32>
    %cst = arith.constant dense<0.000000e+00> : vector<32xf32>
    %1 = vector.multi_reduction <add>, %0, %cst [0] : vector<8x32xf32> to vector<32xf32>
    %2 = vector.shape_cast %1 : vector<32xf32> to vector<1x32xf32>
    %3 = arith.mulf %0, %0 : vector<8x32xf32>
    %cst_1 = arith.constant dense<0.000000e+00> : vector<32xf32>
    %4 = vector.multi_reduction <add>, %3, %cst_1 [0] : vector<8x32xf32> to vector<32xf32>
    %5 = vector.shape_cast %4 : vector<32xf32> to vector<1x32xf32>
    %cst_2 = arith.constant 1.250000e-01 : f32
    %6 = vector.broadcast %cst_2 : f32 to vector<1x32xf32>
    %7 = arith.mulf %2, %6 : vector<1x32xf32>
    %cst_3 = arith.constant 1.250000e-01 : f32
    %8 = vector.broadcast %cst_3 : f32 to vector<1x32xf32>
    %9 = arith.mulf %5, %8 : vector<1x32xf32>
    %10 = arith.mulf %7, %7 : vector<1x32xf32>
    %11 = arith.subf %9, %10 : vector<1x32xf32>
    %cst_4 = arith.constant 0.000000e+00 : f32
    %12 = vector.broadcast %cst_4 : f32 to vector<1x32xf32>
    %13 = arith.maximumf %11, %12 : vector<1x32xf32>
    %c0_5 = arith.constant 0 : index
    %c0_6 = arith.constant 0 : index
    %14 = vector.load %arg1[%c0_5, %c0_6] : memref<1x32xf32, #tpu.memory_space<vmem>>, vector<1x32xf32>
    %cst_7 = arith.constant 9.99999974E-6 : f32
    %15 = vector.broadcast %cst_7 : f32 to vector<1x32xf32>
    %16 = arith.addf %13, %15 : vector<1x32xf32>
    %17 = math.rsqrt %16 : vector<1x32xf32>
    %18 = arith.mulf %14, %17 : vector<1x32xf32>
    %c0_8 = arith.constant 0 : index
    %c0_9 = arith.constant 0 : index
    %19 = vector.load %arg2[%c0_8, %c0_9] : memref<1x32xf32, #tpu.memory_space<vmem>>, vector<1x32xf32>
    %20 = arith.mulf %7, %18 : vector<1x32xf32>
    %21 = arith.subf %19, %20 : vector<1x32xf32>
    %22 = vector.broadcast %18 : vector<1x32xf32> to vector<8x32xf32>
    %23 = arith.mulf %0, %22 : vector<8x32xf32>
    %24 = vector.broadcast %21 : vector<1x32xf32> to vector<8x32xf32>
    %25 = arith.addf %23, %24 : vector<8x32xf32>
    %cst_10 = arith.constant 0.000000e+00 : f32
    %26 = vector.broadcast %cst_10 : f32 to vector<8x32xf32>
    %27 = arith.maximumf %25, %26 : vector<8x32xf32>
    %28 = arith.truncf %27 : vector<8x32xf32> to vector<8x32xbf16>
    %c0_11 = arith.constant 0 : index
    %c0_12 = arith.constant 0 : index
    %29 = vector.load %arg3[%c0_11, %c0_12] : memref<32x256xbf16, #tpu.memory_space<vmem>>, vector<32x256xbf16>
    %cst_13 = arith.constant dense<0.000000e+00> : vector<8x256xf32>
    %30 = tpu.matmul %28, %29, %cst_13 {dimension_numbers = #tpu.dot_dimension_numbers<[1], [0], [0], [1], [0, 0, 1, 1], [], []>} : vector<8x32xbf16>, vector<32x256xbf16>, vector<8x256xf32> -> vector<8x256xf32>
    %cst_14 = arith.constant dense<0.000000e+00> : vector<256xf32>
    %31 = vector.multi_reduction <add>, %30, %cst_14 [0] : vector<8x256xf32> to vector<256xf32>
    %32 = vector.shape_cast %31 : vector<256xf32> to vector<1x256xf32>
    %33 = arith.mulf %30, %30 : vector<8x256xf32>
    %cst_15 = arith.constant dense<0.000000e+00> : vector<256xf32>
    %34 = vector.multi_reduction <add>, %33, %cst_15 [0] : vector<8x256xf32> to vector<256xf32>
    %35 = vector.shape_cast %34 : vector<256xf32> to vector<1x256xf32>
    %cst_16 = arith.constant 1.250000e-01 : f32
    %36 = vector.broadcast %cst_16 : f32 to vector<1x256xf32>
    %37 = arith.mulf %32, %36 : vector<1x256xf32>
    %cst_17 = arith.constant 1.250000e-01 : f32
    %38 = vector.broadcast %cst_17 : f32 to vector<1x256xf32>
    %39 = arith.mulf %35, %38 : vector<1x256xf32>
    %40 = arith.mulf %37, %37 : vector<1x256xf32>
    %41 = arith.subf %39, %40 : vector<1x256xf32>
    %cst_18 = arith.constant 0.000000e+00 : f32
    %42 = vector.broadcast %cst_18 : f32 to vector<1x256xf32>
    %43 = arith.maximumf %41, %42 : vector<1x256xf32>
    %c0_19 = arith.constant 0 : index
    %c0_20 = arith.constant 0 : index
    %44 = vector.load %arg4[%c0_19, %c0_20] : memref<1x256xf32, #tpu.memory_space<vmem>>, vector<1x256xf32>
    %cst_21 = arith.constant 9.99999974E-6 : f32
    %45 = vector.broadcast %cst_21 : f32 to vector<1x256xf32>
    %46 = arith.addf %43, %45 : vector<1x256xf32>
    %47 = math.rsqrt %46 : vector<1x256xf32>
    %48 = arith.mulf %44, %47 : vector<1x256xf32>
    %c0_22 = arith.constant 0 : index
    %c0_23 = arith.constant 0 : index
    %49 = vector.load %arg5[%c0_22, %c0_23] : memref<1x256xf32, #tpu.memory_space<vmem>>, vector<1x256xf32>
    %50 = arith.mulf %37, %48 : vector<1x256xf32>
    %51 = arith.subf %49, %50 : vector<1x256xf32>
    %52 = vector.broadcast %48 : vector<1x256xf32> to vector<8x256xf32>
    %53 = arith.mulf %30, %52 : vector<8x256xf32>
    %54 = vector.broadcast %51 : vector<1x256xf32> to vector<8x256xf32>
    %55 = arith.addf %53, %54 : vector<8x256xf32>
    %c0_24 = arith.constant 0 : index
    %c0_25 = arith.constant 0 : index
    %56 = vector.load %arg6[%c0_24, %c0_25] : memref<8x256xf32, #tpu.memory_space<vmem>>, vector<8x256xf32>
    tpu.vector_store %arg6[%c0_24, %c0_25], %55 {strides = array<i32>} : memref<8x256xf32, #tpu.memory_space<vmem>>, vector<8x256xf32>,
    %57 = arith.truncf %55 : vector<8x256xf32> to vector<8x256xbf16>
    %c0_26 = arith.constant 0 : index
    %c0_27 = arith.constant 0 : index
    %58 = vector.load %arg7[%c0_26, %c0_27] : memref<8x256xbf16, #tpu.memory_space<vmem>>, vector<8x256xbf16>
    tpu.vector_store %arg7[%c0_26, %c0_27], %57 {strides = array<i32>} : memref<8x256xbf16, #tpu.memory_space<vmem>>, vector<8x256xbf16>,
    return
  }
}

module attributes {stable_mosaic.version = 11 : i64} {
  func.func @classifier_kernel(%arg0: i32, %arg1: memref<8x256xbf16, #tpu.memory_space<vmem>>, %arg2: memref<256x128xbf16, #tpu.memory_space<vmem>>, %arg3: memref<8x128xf32, #tpu.memory_space<vmem>>) attributes {dimension_semantics = [#tpu.dimension_semantics<parallel>], iteration_bounds = array<i64: 1>, scalar_prefetch = 0 : i64, scratch_operands = 0 : i64, tpu.core_type = #tpu.core_type<tc>, window_params = [{pipeline_mode = #tpu.pipeline_mode<synchronous>, transform_indices = @transform_0, window_bounds = array<i64: 8, 256>}, {transform_indices = @transform_1, window_bounds = array<i64: 256, 128>}, {transform_indices = @transform_2, window_bounds = array<i64: 8, 128>}]} {
    %c0 = arith.constant 0 : index
    %c0_0 = arith.constant 0 : index
    %0 = vector.load %arg1[%c0, %c0_0] : memref<8x256xbf16, #tpu.memory_space<vmem>>, vector<8x256xbf16>
    %c0_1 = arith.constant 0 : index
    %c0_2 = arith.constant 0 : index
    %1 = vector.load %arg2[%c0_1, %c0_2] : memref<256x128xbf16, #tpu.memory_space<vmem>>, vector<256x128xbf16>
    %cst = arith.constant dense<0.000000e+00> : vector<8x128xf32>
    %2 = tpu.matmul %0, %1, %cst {dimension_numbers = #tpu.dot_dimension_numbers<[1], [0], [0], [1], [0, 0, 1, 1], [], []>} : vector<8x256xbf16>, vector<256x128xbf16>, vector<8x128xf32> -> vector<8x128xf32>
    %c0_3 = arith.constant 0 : index
    %c0_4 = arith.constant 0 : index
    %3 = vector.load %arg3[%c0_3, %c0_4] : memref<8x128xf32, #tpu.memory_space<vmem>>, vector<8x128xf32>
    tpu.vector_store %arg3[%c0_3, %c0_4], %2 {strides = array<i32>} : memref<8x128xf32, #tpu.memory_space<vmem>>, vector<8x128xf32>,
    return
  }
  func.func @transform_0(%arg0: i32) -> (i32, i32) {
    %c0_i32 = arith.constant 0 : i32
    %c0_i32_0 = arith.constant 0 : i32
    %c0_i32_1 = arith.constant 0 : i32
    return %c0_i32, %c0_i32_0 : i32, i32
  }
  func.func @transform_1(%arg0: i32) -> (i32, i32) {
    %c0_i32 = arith.constant 0 : i32
    %c0_i32_0 = arith.constant 0 : i32
    return %c0_i32, %arg0 : i32, i32
  }
  func.func @transform_2(%arg0: i32) -> (i32, i32) {
    %c0_i32 = arith.constant 0 : i32
    %c0_i32_0 = arith.constant 0 : i32
    return %c0_i32, %arg0 : i32, i32
  }
}

</mosaic_0001>

<bundles_post_ra>
// kernel: class_block_forward.3
= control target key start
LH: loop header
LB: loop body
LE: loop exit
PB: predicated region body
PF: predicated region fallthrough
CT: control target
= control target key end

     0   :  { %7 = vsyncpa [#allocation3], 0  ;;  %s375_s0 = inlined_call_operand.vmem [shape: bf16[8,256], index: 0, kind: input, shape index: {}]   ;;  %s376_s1 = inlined_call_operand.hbm [shape: bf16[256,128], index: 1, kind: input, shape index: {}]   ;;  %s377_s2 = inlined_call_operand.hbm [shape: f32[8,128], index: 2, kind: output, shape index: {}]  }
   0x1   :  { %8 = vsyncpa [#allocation4], 0  ;;  %s329_s9 = smov [#allocation2]   ;;  %s281_s13 = scalar_lea.hbm %s376_s1, 2048 }
   0x2   :  { %s16_s10 = sshll.u32 %s329_s9, 4  ;;  %p282_p0 = scmp.ne.s32.totalorder %s376_s1, %s281_s13  ;;  %s17_s10 = int_to_ptr.vmem [resolvable:$true] %s16_s10 }
   0x3   :  { %p285_p1 = scmp.lt.u32.totalorder %s281_s13, %s376_s1 }
   0x5   :  { %p287_p2 = pnand %p285_p1, %p282_p0 }
   0x7   :  { %290 = shalt.err (!%p287_p2)
}
   0x8   :  { %s291_s18 = scalar_lea.vmem %s17_s10, 2048  ;;  %p296_p4 = scmp.lt.s32.totalorder %s17_s10, %s17_s10 }
   0x9   :  { %p292_p3 = scmp.ne.s32.totalorder %s17_s10, %s291_s18  ;;  %p297_p5 = scmp.lt.s32.totalorder %s291_s18, %s291_s18 }
   0xb   :  { %p298_p6 = por %p297_p5, %p296_p4 }
   0xd   :  { %p299_p7 = pnand %p298_p6, %p292_p3 }
   0xf   :  { %302 = shalt.err (!%p299_p7)
}
  0x10   :  { %s330_s19 = smov 64   ;;  %s331_s20 = smov 4  }
  0x11   :  { %22 = dma.hbm_to_vmem [thread:$0]  %s376_s1, 2048, %s17_s10, [#allocation3], %s330_s19, %s330_s19, %s331_s20  }
  0x12   :  { %325 = dma.done.wait [#allocation3], 2048  }
  0x13   :  { %326 = vsyncadd [#allocation3], 4294965248  ;;  %v263_v0 = vld [vmem:[#allocation2 + $0x40] sm:$0xff]   ;;  %v265_v2 = vld [vmem:[#allocation2 + $0x48] sm:$0xff]   ;;  %s332_s24 = smov [#allocation5]  }
  0x14   :  { %v264_v1 = vld [vmem:[#allocation2] sm:$0xff]   ;;  %237 = vmatprep.subr.bf16.mxu0 %v263_v0  ;;  %v266_v3 = vld [vmem:[#allocation2 + $0x8] sm:$0xff]   ;;  %v267_v4 = vld [vmem:[#allocation2 + $0x50] sm:$0xff]   ;;  %s210_s25 = sshll.u32 %s332_s24, 4  ;;  %s211_s25 = int_to_ptr.vmem [resolvable:$true] %s210_s25 }
  0x15   :  { %238 = vmatpush3.bf16.msra.mxu0 %v264_v1  ;;  %v268_v5 = vld [vmem:[#allocation2 + $0x10] sm:$0xff]   ;;  %v269_v6 = vld [vmem:[#allocation2 + $0x58] sm:$0xff]   ;;  %v271_v8 = vld [vmem:[#allocation2 + $0x60] sm:$0xff]   ;;  %p308_p9 = scmp.lt.s32.totalorder %s211_s25, %s211_s25 }
  0x16   :  { %239 = vmatprep.subr.bf16.mxu0 %v265_v2  ;;  %v270_v7 = vld [vmem:[#allocation2 + $0x18] sm:$0xff]   ;;  %v272_v9 = vld [vmem:[#allocation2 + $0x20] sm:$0xff]   ;;  %v273_v10 = vld [vmem:[#allocation2 + $0x68] sm:$0xff]  }
  0x17   :  { %v27_v11 = vld [vmem:[%s375_s0] sm:$0xff]  ;;  %v274_v13 = vld [vmem:[#allocation2 + $0x28] sm:$0xff]   ;;  %v275_v14 = vld [vmem:[#allocation2 + $0x70] sm:$0xff]   ;;  %s303_s0 = scalar_lea.vmem %s211_s25, 128 }
  0x18   :  { %v220_v12 = vcombine.high %v27_v11, %v27_v11  ;;  %v276_v15 = vld [vmem:[#allocation2 + $0x30] sm:$0xff]   ;;  %v277_v16 = vld [vmem:[#allocation2 + $0x78] sm:$0xff]   ;;  %v219_v18 = vcombine.low %v27_v11, %v27_v11  ;;  %p304_p8 = scmp.ne.s32.totalorder %s211_s25, %s303_s0  ;;  %p309_p10 = scmp.lt.s32.totalorder %s303_s0, %s303_s0 }
  0x19   :  { %240 = vmatpush3.bf16.msra.mxu0 %v266_v3  ;;  %v278_v17 = vld [vmem:[#allocation2 + $0x38] sm:$0xff]  }
  0x1a   :  { %241 = vmatprep.subr.bf16.mxu0 %v267_v4  ;;  %195 = vmatprep.mubr.bf16.mxu0 %v220_v12  ;;  %p310_p11 = por %p309_p10, %p308_p9 }
  0x1c   :  { %p311_p12 = pnand %p310_p11, %p304_p8 }
  0x1d   :  { %242 = vmatpush3.bf16.msra.mxu0 %v268_v5 }
  0x1e   :  { %243 = vmatprep.subr.bf16.mxu0 %v269_v6 }
  0x21   :  { %244 = vmatpush3.bf16.msra.mxu0 %v270_v7 }
  0x22   :  { %245 = vmatprep.subr.bf16.mxu0 %v271_v8 }
  0x25   :  { %246 = vmatpush3.bf16.msra.mxu0 %v272_v9 }
  0x26   :  { %247 = vmatprep.subr.bf16.mxu0 %v273_v10 }
  0x29   :  { %248 = vmatpush3.bf16.msra.mxu0 %v274_v13 }
  0x2a   :  { %249 = vmatprep.subr.bf16.mxu0 %v275_v14 }
  0x2d   :  { %250 = vmatpush3.bf16.msra.mxu0 %v276_v15 }
  0x2e   :  { %251 = vmatprep.subr.bf16.mxu0 %v277_v16 }
  0x31   :  { %252 = vmatpush3.bf16.msra.mxu0 %v278_v17 }
  0x34   :  { %196 = vmatmul.mubr.bf16.vlgmr.msra.gmra.mrb[0].mxu0 %v219_v18 }
 0x107   :  { %v253_v19 = vpop.f32.mrb[0].mxu0 }
 0x108   :  { %v254_v20 = vpop.f32.mrb[1].mxu0 }
 0x109   :  { %v255_v21 = vadd.f32 %v254_v20, %v253_v19  ;;  %v256_v22 = vpop.f32.mrb[2].mxu0 }
 0x10a   :  { %v257_v23 = vpop.f32.mrb[3].mxu0 }
 0x10b   :  { %203 = vst [vmem:[#allocation5] sm:$0xff] %v255_v21 }
 0x10c   :  { %314 = shalt.err (!%p311_p12)
}
 0x10d   :  { %s315_s28 = scalar_lea.hbm %s377_s2, 128 }
 0x10e   :  { %p316_p13 = scmp.ne.s32.totalorder %s377_s2, %s315_s28  ;;  %p319_p0 = scmp.lt.u32.totalorder %s315_s28, %s377_s2 }
 0x110   :  { %p321_p1 = pnand %p319_p0, %p316_p13 }
 0x112   :  { %324 = shalt.err (!%p321_p1)
}
 0x113   :  { %213 = dma.vmem_to_hbm [thread:$0]  %s211_s25, 128, %s377_s2, [#allocation4]  }
 0x114   :  { %327 = dma.done.wait [#allocation4], 128  }
 0x115   :  { %328 = vsyncadd [#allocation4], 4294967168 }
 0x116   :  { %217 = vsyncpa [#allocation3], 1 }
 0x117   :  { %218 = vsyncpa [#allocation4], 1 }

// kernel: class_block_forward.2
= control target key start
LH: loop header
LB: loop body
LE: loop exit
PB: predicated region body
PF: predicated region fallthrough
CT: control target
= control target key end

     0   :  { %13 = vsyncpa [#allocation3], 0  ;;  %s522_s0 = inlined_call_operand.hbm [shape: f32[8,32], index: 0, kind: input, shape index: {}]   ;;  %s523_s1 = inlined_call_operand.vmem [shape: f32[1,32], index: 1, kind: input, shape index: {}]   ;;  %s524_s2 = inlined_call_operand.vmem [shape: f32[1,32], index: 2, kind: input, shape index: {}]   ;;  %s525_s3 = inlined_call_operand.hbm [shape: bf16[32,256], index: 3, kind: input, shape index: {}]   ;;  %s526_s4 = inlined_call_operand.vmem [shape: f32[1,256], index: 4, kind: input, shape index: {}]   ;;  %s527_s5 = inlined_call_operand.vmem [shape: f32[1,256], index: 5, kind: input, shape index: {}]   ;;  %s528_s6 = inlined_call_operand.hbm [shape: f32[8,256], index: 6, kind: output, shape index: {0}]   ;;  %s529_s7 = inlined_call_operand.vmem [shape: bf16[8,256], index: 7, kind: output, shape index: {1}]  }
   0x1   :  { %14 = vsyncpa [#allocation6], 0 }
   0x2   :  { %15 = vsyncpa [#allocation4], 0  ;;  %s403_s24 = smov [#allocation2]   ;;  %s404_s26 = smov [#allocation5]  }
   0x3   :  { %s22_s25 = sshll.u32 %s403_s24, 4  ;;  %s35_s27 = sshll.u32 %s404_s26, 4  ;;  %s23_s25 = int_to_ptr.vmem [resolvable:$true] %s22_s25  ;;  %s450_s27 = int_to_ptr.vmem [resolvable:$true] %s35_s27 }
   0x4   :  { %s331_s30 = scalar_lea.hbm %s522_s0, 128 }
   0x5   :  { %p332_p0 = scmp.ne.s32.totalorder %s522_s0, %s331_s30  ;;  %p335_p1 = scmp.lt.u32.totalorder %s331_s30, %s522_s0 }
   0x7   :  { %p337_p2 = pnand %p335_p1, %p332_p0 }
   0x9   :  { %340 = shalt.err (!%p337_p2)
}
   0xa   :  { %s341_s12 = scalar_lea.vmem %s23_s25, 128  ;;  %p346_p4 = scmp.lt.s32.totalorder %s23_s25, %s23_s25 }
   0xb   :  { %p342_p3 = scmp.ne.s32.totalorder %s23_s25, %s341_s12  ;;  %p347_p5 = scmp.lt.s32.totalorder %s341_s12, %s341_s12 }
   0xd   :  { %p348_p6 = por %p347_p5, %p346_p4 }
   0xf   :  { %p349_p7 = pnand %p348_p6, %p342_p3 }
  0x11   :  { %352 = shalt.err (!%p349_p7)
}
  0x12   :  { %25 = dma.hbm_to_vmem [thread:$0]  %s522_s0, 128, %s23_s25, [#allocation3]  }
  0x13   :  { %s353_s17 = scalar_lea.hbm %s525_s3, 512 }
  0x14   :  { %p354_p8 = scmp.ne.s32.totalorder %s525_s3, %s353_s17  ;;  %p357_p9 = scmp.lt.u32.totalorder %s353_s17, %s525_s3 }
  0x16   :  { %p359_p10 = pnand %p357_p9, %p354_p8 }
  0x18   :  { %362 = shalt.err (!%p359_p10)
}
  0x19   :  { %s363_s22 = scalar_lea.vmem %s450_s27, 512  ;;  %p368_p12 = scmp.lt.s32.totalorder %s450_s27, %s450_s27 }
  0x1a   :  { %p364_p11 = scmp.ne.s32.totalorder %s450_s27, %s363_s22  ;;  %p369_p13 = scmp.lt.s32.totalorder %s363_s22, %s363_s22 }
  0x1c   :  { %p370_p0 = por %p369_p13, %p368_p12 }
  0x1e   :  { %p371_p1 = pnand %p370_p0, %p364_p11 }
  0x20   :  { %374 = shalt.err (!%p371_p1)
}
  0x21   :  { %s405_s0 = smov 128   ;;  %s406_s23 = smov 8  }
  0x22   :  { %41 = dma.hbm_to_vmem [thread:$0]  %s525_s3, 512, %s450_s27, [#allocation6], %s405_s0, %s405_s0, %s406_s23  }
  0x23   :  { %397 = dma.done.wait [#allocation3], 128  }
  0x24   :  { %398 = vsyncadd [#allocation3], 4294967168 }
  0x25   :  { %399 = dma.done.wait [#allocation6], 512  }
  0x26   :  { %400 = vsyncadd [#allocation6], 4294966784  ;;  %v407_v0 = vmov 0   ;;  %v319_v1 = vld [vmem:[#allocation5 + $0x4] ss:$8 sps:$4 sm:$0xff]   ;;  %vm54_vm0 = vcmask 261120   ;;  %v83_v27 = vlaneseq }
  0x27   :  { %157 = vmatprep.mubr.bf16.mxu0 %v407_v0  ;;  %v321_v2 = vld [vmem:[#allocation5] ss:$8 sps:$4 sm:$0xff]   ;;  %125 = vmatprep.subr.bf16.mxu0 %v319_v1  ;;  %v322_v3 = vld [vmem:[#allocation5 + $0x14] ss:$8 sps:$4 sm:$0xff]   ;;  %v324_v5 = vld [vmem:[#allocation5 + $0x10] ss:$8 sps:$4 sm:$0xff]  }
  0x28   :  { %v53_v4 = vld [vmem:[#allocation2] sm:$0xff]  ;;  %126 = vmatpush1.bf16.msra.mxu0 %v321_v2  ;;  %v483_v28 = vshrl.u32 %v83_v27, 7  ;;  %v75_v29 = vld [vmem:[%s523_s1] sm:$0x1] }
  0x29   :  { %v55_v6 = vsel %vm54_vm0, %v53_v4, 0.0  ;;  %v62_v7 = vmul.f32 %v53_v4, %v53_v4  ;;  %127 = vmatprep.subr.bf16.mxu0 %v322_v3  ;;  %v79_v33 = vld [vmem:[%s524_s2] sm:$0x1] }
  0x2a   :  { %v56_v8 = vrot.slane %v55_v6, 4  ;;  %v489_v30 = vsub.s32 0, %v483_v28 }
  0x2b   :  { %v63_v9 = vsel %vm54_vm0, %v62_v7, 0.0 }
  0x2c   :  { %v57_v10 = vadd.f32 %v56_v8, %v55_v6  ;;  %v64_v11 = vrot.slane %v63_v9, 4  ;;  %128 = vmatpush1.bf16.msra.mxu0 %v324_v5 }
  0x2e   :  { %v58_v12 = vrot.slane %v57_v10, 2  ;;  %v65_v13 = vadd.f32 %v64_v11, %v63_v9 }
  0x30   :  { %v59_v14 = vadd.f32 %v58_v12, %v57_v10  ;;  %v66_v15 = vrot.slane %v65_v13, 2 }
  0x32   :  { %v60_v16 = vrot.slane %v59_v14, 1  ;;  %v67_v17 = vadd.f32 %v66_v15, %v65_v13 }
  0x34   :  { %v61_v18 = vadd.f32 %v60_v16, %v59_v14  ;;  %v68_v19 = vrot.slane %v67_v17, 1 }
  0x36   :  { %v69_v20 = vadd.f32 %v68_v19, %v67_v17  ;;  %v70_v21 = vmul.f32 0.125, %v61_v18 }
  0x38   :  { %v71_v22 = vmul.f32 0.125, %v69_v20  ;;  %v72_v23 = vmul.f32 %v70_v21, %v70_v21  ;;  %v408_v20 = vmov 1966171168  }
  0x3a   :  { %v73_v24 = vsub.f32 %v71_v22, %v72_v23 }
  0x3c   :  { %v74_v25 = vmax.f32 %v73_v24, 0.0 }
  0x3e   :  { %v76_v26 = vadd.f32 1e-05, %v74_v25 }
  0x40   :  { %325 = vrsqrt.f32 %v76_v26 }
  0x4a   :  { %v326_v31 = vpop.eup %325 }
  0x4b   :  { %v78_v32 = vmul.f32 %v326_v31, %v75_v29  ;;  %v202_v29 = vld [vmem:[%s526_s4] sm:$0x3]  ;;  %s409_s4 = smov [#allocation7]  }
  0x4c   :  { %s291_s8 = sshll.u32 %s409_s4, 4  ;;  %s292_s8 = int_to_ptr.vmem [resolvable:$true] %s291_s8 }
  0x4d   :  { %v80_v34 = vmul.f32 %v78_v32, %v70_v21  ;;  %v86_v35 = vrot.slane %v78_v32, %v489_v30  ;;  %v211_v21 = vunpack.c.l.s4 %v408_v20  ;;  %v234_v32 = vsub.s32 1, %v483_v28  ;;  %s375_s9 = scalar_lea.vmem %s292_s8, 256  ;;  %p380_p3 = scmp.lt.s32.totalorder %s292_s8, %s292_s8 }
  0x4e   :  { %p376_p2 = scmp.ne.s32.totalorder %s292_s8, %s375_s9  ;;  %p381_p4 = scmp.lt.s32.totalorder %s375_s9, %s375_s9 }
  0x4f   :  { %v81_v36 = vsub.f32 %v79_v33, %v80_v34  ;;  %v88_v37 = vmul.f32 %v86_v35, %v53_v4  ;;  %v212_v22 = vunpack.c.0.s8 %v211_v21 }
  0x50   :  { %p382_p5 = por %p381_p4, %p380_p3 }
  0x51   :  { %v93_v38 = vrot.slane %v81_v36, %v489_v30  ;;  %v215_v24 = vsub.s32 %v212_v22, %v483_v28 }
  0x52   :  { %p383_p6 = pnand %p382_p5, %p376_p2 }
  0x53   :  { %v95_v39 = vadd.f32 %v93_v38, %v88_v37 }
  0x55   :  { %v96_v40 = vmax.f32 %v95_v39, 0.0 }
  0x57   :  { %v97_v41 = vpack.c.bf16 %v96_v40, %v96_v40 }
  0x59   :  { %309 = vmatmul.mubr.msk.bf16.vlgmr.msra.gmra.mrb[0].mxu0 %vm54_vm0, %v97_v41 }
 0x12c   :  { %v159_v42 = vpop.f32.mrb[0].mxu0 }
 0x12d   :  { %v166_v43 = vrot.slane %v159_v42, 4  ;;  %v178_v44 = vmul.f32 %v159_v42, %v159_v42  ;;  %v161_v45 = vpop.f32.mrb[1].mxu0 }
 0x12e   :  { %v172_v46 = vrot.slane %v161_v45, 4  ;;  %v179_v47 = vmul.f32 %v161_v45, %v161_v45  ;;  %v163_v48 = vpop.f32.mrb[2].mxu0 }
 0x12f   :  { %v167_v49 = vadd.f32 %v166_v43, %v159_v42  ;;  %v180_v50 = vrot.slane %v178_v44, 4  ;;  %v164_v51 = vpop.f32.mrb[3].mxu0  ;;  %v226_v43 = vld [vmem:[%s527_s5] sm:$0x3] }
 0x130   :  { %v173_v52 = vadd.f32 %v172_v46, %v161_v45  ;;  %v186_v53 = vrot.slane %v179_v47, 4 }
 0x131   :  { %v168_v54 = vrot.slane %v167_v49, 2  ;;  %v181_v55 = vadd.f32 %v180_v50, %v178_v44 }
 0x132   :  { %v174_v56 = vrot.slane %v173_v52, 2  ;;  %v187_v57 = vadd.f32 %v186_v53, %v179_v47 }
 0x133   :  { %v169_v58 = vadd.f32 %v168_v54, %v167_v49  ;;  %v182_v59 = vrot.slane %v181_v55, 2 }
 0x134   :  { %v175_v60 = vadd.f32 %v174_v56, %v173_v52  ;;  %v188_v61 = vrot.slane %v187_v57, 2 }
 0x135   :  { %v170_v62 = vrot.slane %v169_v58, 1  ;;  %v183_v63 = vadd.f32 %v182_v59, %v181_v55 }
 0x136   :  { %v176_v0 = vrot.slane %v175_v60, 1  ;;  %v189_v1 = vadd.f32 %v188_v61, %v187_v57 }
 0x137   :  { %v171_v2 = vadd.f32 %v170_v62, %v169_v58  ;;  %v184_v3 = vrot.slane %v183_v63, 1 }
 0x138   :  { %v177_v4 = vadd.f32 %v176_v0, %v175_v60  ;;  %v190_v5 = vrot.slane %v189_v1, 1 }
 0x139   :  { %v185_v6 = vadd.f32 %v184_v3, %v183_v63  ;;  %v192_v7 = vmul.f32 0.125, %v171_v2 }
 0x13a   :  { %v191_v8 = vadd.f32 %v190_v5, %v189_v1  ;;  %v193_v9 = vmul.f32 0.125, %v177_v4 }
 0x13b   :  { %v194_v10 = vmul.f32 0.125, %v185_v6  ;;  %v196_v11 = vmul.f32 %v192_v7, %v192_v7 }
 0x13c   :  { %v195_v12 = vmul.f32 0.125, %v191_v8  ;;  %v197_v13 = vmul.f32 %v193_v9, %v193_v9 }
 0x13d   :  { %v198_v14 = vsub.f32 %v194_v10, %v196_v11 }
 0x13e   :  { %v199_v15 = vsub.f32 %v195_v12, %v197_v13 }
 0x13f   :  { %v200_v16 = vmax.f32 %v198_v14, 0.0 }
 0x140   :  { %v201_v17 = vmax.f32 %v199_v15, 0.0 }
 0x141   :  { %v203_v18 = vadd.f32 1e-05, %v200_v16 }
 0x142   :  { %v204_v19 = vadd.f32 1e-05, %v201_v17 }
 0x143   :  { %327 = vrsqrt.f32 %v203_v18 }
 0x144   :  { %329 = vrsqrt.f32 %v204_v19 }
 0x14d   :  { %v328_v23 = vpop.eup %327 }
 0x14e   :  { %v330_v25 = vpop.eup %329 }
 0x14f   :  { %v209_v26 = vcombine.low %v328_v23, %v330_v25 }
 0x151   :  { %v216_v27 = vrot.slane %v209_v26, %v215_v24 }
 0x153   :  { %v223_v31 = vrot.slane %v216_v27, %v215_v24 }
 0x155   :  { %v225_v33 = vmul.f32 %v223_v31, %v202_v29 }
 0x157   :  { %v235_v34 = vrot.slane %v225_v33, %v234_v32  ;;  %v231_v35 = vrot.slane %v225_v33, %v489_v30 }
 0x159   :  { %v239_v36 = vmul.f32 %v235_v34, %v193_v9  ;;  %v260_v37 = vmul.f32 %v235_v34, %v161_v45  ;;  %v238_v38 = vmul.f32 %v231_v35, %v192_v7  ;;  %v259_v39 = vmul.f32 %v231_v35, %v159_v42 }
 0x15b   :  { %v242_v40 = vcombine.low %v238_v38, %v239_v36 }
 0x15d   :  { %v249_v41 = vrot.slane %v242_v40, %v215_v24 }
 0x15f   :  { %v256_v44 = vrot.slane %v249_v41, %v215_v24 }
 0x161   :  { %v258_v46 = vsub.f32 %v226_v43, %v256_v44 }
 0x163   :  { %v265_v28 = vrot.slane %v258_v46, %v489_v30  ;;  %v269_v47 = vrot.slane %v258_v46, %v234_v32 }
 0x165   :  { %v272_v48 = vadd.f32 %v265_v28, %v259_v39  ;;  %v273_v49 = vadd.f32 %v269_v47, %v260_v37 }
 0x167   :  { %274 = vst [vmem:[#allocation7] sm:$0xff] %v272_v48  ;;  %275 = vst [vmem:[#allocation7 + $0x8] sm:$0xff] %v273_v49  ;;  %v311_v45 = vpack.c.bf16 %v273_v49, %v272_v48 }
 0x168   :  { %386 = shalt.err (!%p383_p6)
}
 0x169   :  { %s387_s11 = scalar_lea.hbm %s528_s6, 256 }
 0x16a   :  { %p388_p7 = scmp.ne.s32.totalorder %s528_s6, %s387_s11  ;;  %p391_p8 = scmp.lt.u32.totalorder %s387_s11, %s528_s6 }
 0x16c   :  { %p393_p9 = pnand %p391_p8, %p388_p7 }
 0x16e   :  { %396 = shalt.err (!%p393_p9)
}
 0x16f   :  { %294 = dma.vmem_to_hbm [thread:$0]  %s292_s8, 256, %s528_s6, [#allocation4]   ;;  %284 = vst [vmem:[%s529_s7] sm:$0xff] %v311_v45 }
 0x170   :  { %401 = dma.done.wait [#allocation4], 256  }
 0x171   :  { %402 = vsyncadd [#allocation4], 4294967040 }
 0x172   :  { %302 = vsyncpa [#allocation3], 1 }
 0x173   :  { %303 = vsyncpa [#allocation6], 1 }
 0x174   :  { %304 = vsyncpa [#allocation4], 1 }

</bundles_post_ra>
